<compile_context>
chip_gen: v6e
topology: v6e:2x2x1
jax: 0.10.0
libtpu: 0.0.40
codegen_flags: <defaults>
</compile_context>

<pallas_src>
import jax
import jax.numpy as jnp
from jax.experimental import pallas as pl
from jax.experimental.pallas import tpu as pltpu

EPS = 1e-5
_LANE = 128
_SUBLANE = 8
OUT_PAD = 128  # lane-dense padded width of the final (out_features == 1) layer


def _round_up(n, m):
    return ((n + m - 1) // m) * m


def _bn_relu_folded(h, gamma, beta, inv_b):
    """BatchNorm1d (training stats, biased var) + ReLU, folded to per-feature scale/shift.

    All statistics / rsqrt / affine math stays on (1, H) f32 vectors; only the final
    h * scale + shift (and the h*h for the sum-of-squares) touch the (B, H) tile.
    """
    mean = jnp.sum(h, axis=0, keepdims=True) * inv_b            # (1, H)
    mean_sq = jnp.sum(h * h, axis=0, keepdims=True) * inv_b     # (1, H)
    var = jnp.maximum(mean_sq - mean * mean, 0.0)               # (1, H)
    scale = gamma * jax.lax.rsqrt(var + EPS)                    # (1, H)  (EUP rsqrt)
    shift = beta - mean * scale                                 # (1, H)
    return jnp.maximum(h * scale + shift, 0.0)


def _make_kernel(b_real, b_pad):
    """Build the fused kernel; batch size is static at trace time."""
    need_mask = b_real != b_pad
    inv_b = 1.0 / float(b_real)

    def kernel(x_ref, w1_ref, w2_ref, w3_ref, p_ref, o_ref):
        # Packed per-feature parameters: rows [g1, be1, g2, be2, b3, pad, pad, pad].
        g1, be1 = p_ref[0:1, :], p_ref[1:2, :]
        g2, be2 = p_ref[2:3, :], p_ref[3:4, :]
        b3 = p_ref[4:5, : o_ref.shape[1]]

        # ---- Linear 1 (bf16 MXU, f32 acc; bias elided, BN cancels it exactly) ----
        # Padded batch rows of x are zero -> their layer-1 activations are zero and do
        # not perturb the (sum / B_real) statistics.
        h = jnp.dot(x_ref[...], w1_ref[...], preferred_element_type=jnp.float32)
        # ---- BatchNorm1d + ReLU (folded, f32) ----
        h = _bn_relu_folded(h, g1, be1, inv_b)
        if need_mask:
            # Re-zero padded batch rows so layer-2 statistics stay exact.
            row = jax.lax.broadcasted_iota(jnp.int32, (b_pad, 1), 0)
            h = h * (row < b_real).astype(jnp.float32)

        # ---- Linear 2 (bias elided) ----
        h2 = jnp.dot(h.astype(jnp.bfloat16), w2_ref[...],
                     preferred_element_type=jnp.float32)
        # ---- BatchNorm1d + ReLU ----
        h2 = _bn_relu_folded(h2, g2, be2, inv_b)

        # ---- Linear 3 -> lane-dense (B_pad, 128) slab (real output in column 0) ----
        out = jnp.dot(h2.astype(jnp.bfloat16), w3_ref[...],
                      preferred_element_type=jnp.float32) + b3
        o_ref[...] = out.astype(o_ref.dtype)

    return kernel


def discriminator_forward(x, params):
    """x: (B, input_dim) float32. params: dict of f32 weights (see init_params)."""
    B, D = x.shape
    H = params["w1"].shape[1]
    B_pad = _round_up(max(B, 1), _SUBLANE)
    D_pad = _round_up(D, _LANE)
    H_pad = _round_up(H, _LANE)

    f32 = jnp.float32
    # bf16 matmul operands, zero-padded to sublane/lane-dense shapes (padding is inert).
    x_p = jnp.pad(x, ((0, B_pad - B), (0, D_pad - D))).astype(jnp.bfloat16)
    w1_p = jnp.pad(params["w1"], ((0, D_pad - D), (0, H_pad - H))).astype(jnp.bfloat16)
    w2_p = jnp.pad(params["w2"], ((0, H_pad - H), (0, H_pad - H))).astype(jnp.bfloat16)
    w3_p = jnp.pad(params["w3"], ((0, H_pad - H), (0, OUT_PAD - 1))).astype(jnp.bfloat16)

    # Pack the per-feature vectors into one (8, H_pad) f32 array -> single DMA.
    def _row(v):
        return jnp.pad(v.astype(f32), ((0, 0), (0, H_pad - v.shape[1])))

    vec = jnp.concatenate(
        [_row(params["g1"]), _row(params["be1"]),
         _row(params["g2"]), _row(params["be2"]),
         _row(params["b3"]),
         jnp.zeros((3, H_pad), f32)],
        axis=0,
    )

    # Advisory cost estimate (3 matmuls + 2 rsqrt vectors).
    flops = 2 * B_pad * (D_pad * H_pad + H_pad * H_pad + H_pad * OUT_PAD)
    bytes_in = 2 * (x_p.size + w1_p.size + w2_p.size + w3_p.size) + 4 * vec.size
    bytes_out = 4 * B_pad * OUT_PAD
    cost = pl.CostEstimate(flops=int(flops), transcendentals=int(2 * H_pad),
                           bytes_accessed=int(bytes_in + bytes_out))

    # VMEM budget: double-buffered I/O + f32 intermediates + headroom
    # (kept well under v7x's 64 MiB physical VMEM at these shapes).
    resident = 2 * (bytes_in + bytes_out) + 4 * B_pad * H_pad * 4
    vmem_limit = int(min(100 * 1024 * 1024, max(resident + (8 << 20), 32 << 20)))

    vmem = pl.BlockSpec(memory_space=pltpu.MemorySpace.VMEM)
    out_padded = pl.pallas_call(
        _make_kernel(B, B_pad),
        out_shape=jax.ShapeDtypeStruct((B_pad, OUT_PAD), jnp.float32),
        in_specs=[vmem] * 5,
        out_specs=vmem,
        compiler_params=pltpu.CompilerParams(vmem_limit_bytes=vmem_limit),
        cost_estimate=cost,
    )(x_p, w1_p, w2_p, w3_p, vec)

    return out_padded[:B, :1]


def init_params(key, input_dim, hidden_dim):
    """Deterministic synthetic parameters (PyTorch-like init, stored transposed (in, out))."""
    k1, k2, k3 = jax.random.split(key, 3)

    def lin(k, fan_in, fan_out):
        bound = 1.0 / jnp.sqrt(fan_in)
        kw, kb = jax.random.split(k)
        w = jax.random.uniform(kw, (fan_in, fan_out), jnp.float32, -bound, bound)
        b = jax.random.uniform(kb, (1, fan_out), jnp.float32, -bound, bound)
        return w, b

    w1, b1 = lin(k1, input_dim, hidden_dim)
    w2, b2 = lin(k2, hidden_dim, hidden_dim)
    w3, b3 = lin(k3, hidden_dim, 1)
    return {
        "w1": w1, "b1": b1,
        "g1": jnp.ones((1, hidden_dim), jnp.float32),
        "be1": jnp.zeros((1, hidden_dim), jnp.float32),
        "w2": w2, "b2": b2,
        "g2": jnp.ones((1, hidden_dim), jnp.float32),
        "be2": jnp.zeros((1, hidden_dim), jnp.float32),
        "w3": w3, "b3": b3,
    }


def _reference_f32(x, p):
    """Pure f32 PyTorch-semantics reference (centered variance, biases included)."""
    h = x @ p["w1"] + p["b1"]
    m = h.mean(0, keepdims=True)
    v = ((h - m) ** 2).mean(0, keepdims=True)
    h = (h - m) / jnp.sqrt(v + EPS) * p["g1"] + p["be1"]
    h = jnp.maximum(h, 0.0)
    h = h @ p["w2"] + p["b2"]
    m = h.mean(0, keepdims=True)
    v = ((h - m) ** 2).mean(0, keepdims=True)
    h = (h - m) / jnp.sqrt(v + EPS) * p["g2"] + p["be2"]
    h = jnp.maximum(h, 0.0)
    return h @ p["w3"] + p["b3"]


def _reference_mirror(x, p):
    """Reference mirroring the kernel's numerics (bf16 matmuls, folded BN, elided b1/b2)."""
    bf16 = jnp.bfloat16

    def bn_relu(h, g, be):
        m = jnp.mean(h, 0, keepdims=True)
        ms = jnp.mean(h * h, 0, keepdims=True)
        v = jnp.maximum(ms - m * m, 0.0)
        s = g * jax.lax.rsqrt(v + EPS)
        return jnp.maximum(h * s + (be - m * s), 0.0)

    h = jnp.dot(x.astype(bf16), p["w1"].astype(bf16), preferred_element_type=jnp.float32)
    h = bn_relu(h, p["g1"], p["be1"])
    h2 = jnp.dot(h.astype(bf16), p["w2"].astype(bf16), preferred_element_type=jnp.float32)
    h2 = bn_relu(h2, p["g2"], p["be2"])
    return jnp.dot(h2.astype(bf16), p["w3"].astype(bf16),
                   preferred_element_type=jnp.float32) + p["b3"]


if __name__ == "__main__":
    key = jax.random.PRNGKey(0)
    kx, kx2, kp = jax.random.split(key, 3)

    batch, input_dim, hidden_dim = 8, 16, 32
    params = init_params(kp, input_dim, hidden_dim)

    # --- sublane-aligned batch ---
    x = jax.random.normal(kx, (batch, input_dim), jnp.float32)
    out = jax.block_until_ready(discriminator_forward(x, params))
    assert out.shape == (batch, 1)
    assert jnp.allclose(out, _reference_mirror(x, params), atol=1e-3, rtol=1e-3), \
        "mismatch vs bf16-mirror reference"
    assert jnp.allclose(out, _reference_f32(x, params), atol=5e-2, rtol=5e-2), \
        "mismatch vs f32 reference"

    # --- non-multiple-of-8 batch (exercises the padded-row masking path) ---
    x2 = jax.random.normal(kx2, (6, input_dim), jnp.float32)
    out2 = jax.block_until_ready(discriminator_forward(x2, params))
    assert out2.shape == (6, 1)
    assert jnp.allclose(out2, _reference_mirror(x2, params), atol=1e-3, rtol=1e-3), \
        "mismatch vs bf16-mirror reference (masked batch)"
    assert jnp.allclose(out2, _reference_f32(x2, params), atol=5e-2, rtol=5e-2), \
        "mismatch vs f32 reference (masked batch)"

    print("KERNEL_OK")
</pallas_src>

<mosaic_0001>
module attributes {stable_mosaic.version = 11 : i64} {
  func.func @kernel(%arg0: memref<8x128xbf16, #tpu.memory_space<vmem>>, %arg1: memref<128x128xbf16, #tpu.memory_space<vmem>>, %arg2: memref<128x128xbf16, #tpu.memory_space<vmem>>, %arg3: memref<128x128xbf16, #tpu.memory_space<vmem>>, %arg4: memref<8x128xf32, #tpu.memory_space<vmem>>, %arg5: memref<8x128xf32, #tpu.memory_space<vmem>>) attributes {dimension_semantics = [], scalar_prefetch = 0 : i64, scratch_operands = 0 : i64, tpu.core_type = #tpu.core_type<tc>} {
    %c0 = arith.constant 0 : index
    %c0_0 = arith.constant 0 : index
    %0 = vector.load %arg4[%c0, %c0_0] : memref<8x128xf32, #tpu.memory_space<vmem>>, vector<1x128xf32>
    %c1 = arith.constant 1 : index
    %c0_1 = arith.constant 0 : index
    %1 = vector.load %arg4[%c1, %c0_1] : memref<8x128xf32, #tpu.memory_space<vmem>>, vector<1x128xf32>
    %c2 = arith.constant 2 : index
    %c0_2 = arith.constant 0 : index
    %2 = vector.load %arg4[%c2, %c0_2] : memref<8x128xf32, #tpu.memory_space<vmem>>, vector<1x128xf32>
    %c3 = arith.constant 3 : index
    %c0_3 = arith.constant 0 : index
    %3 = vector.load %arg4[%c3, %c0_3] : memref<8x128xf32, #tpu.memory_space<vmem>>, vector<1x128xf32>
    %c4 = arith.constant 4 : index
    %c0_4 = arith.constant 0 : index
    %4 = vector.load %arg4[%c4, %c0_4] : memref<8x128xf32, #tpu.memory_space<vmem>>, vector<1x128xf32>
    %c0_5 = arith.constant 0 : index
    %c0_6 = arith.constant 0 : index
    %5 = vector.load %arg0[%c0_5, %c0_6] : memref<8x128xbf16, #tpu.memory_space<vmem>>, vector<8x128xbf16>
    %c0_7 = arith.constant 0 : index
    %c0_8 = arith.constant 0 : index
    %6 = vector.load %arg1[%c0_7, %c0_8] : memref<128x128xbf16, #tpu.memory_space<vmem>>, vector<128x128xbf16>
    %cst = arith.constant dense<0.000000e+00> : vector<8x128xf32>
    %7 = tpu.matmul %5, %6, %cst {dimension_numbers = #tpu.dot_dimension_numbers<[1], [0], [0], [1], [0, 0, 1, 1], [], []>} : vector<8x128xbf16>, vector<128x128xbf16>, vector<8x128xf32> -> vector<8x128xf32>
    %cst_9 = arith.constant dense<0.000000e+00> : vector<128xf32>
    %8 = vector.multi_reduction <add>, %7, %cst_9 [0] : vector<8x128xf32> to vector<128xf32>
    %9 = vector.shape_cast %8 : vector<128xf32> to vector<1x128xf32>
    %cst_10 = arith.constant 1.250000e-01 : f32
    %10 = vector.broadcast %cst_10 : f32 to vector<1x128xf32>
    %11 = arith.mulf %9, %10 : vector<1x128xf32>
    %12 = arith.mulf %7, %7 : vector<8x128xf32>
    %cst_11 = arith.constant dense<0.000000e+00> : vector<128xf32>
    %13 = vector.multi_reduction <add>, %12, %cst_11 [0] : vector<8x128xf32> to vector<128xf32>
    %14 = vector.shape_cast %13 : vector<128xf32> to vector<1x128xf32>
    %cst_12 = arith.constant 1.250000e-01 : f32
    %15 = vector.broadcast %cst_12 : f32 to vector<1x128xf32>
    %16 = arith.mulf %14, %15 : vector<1x128xf32>
    %17 = arith.mulf %11, %11 : vector<1x128xf32>
    %18 = arith.subf %16, %17 : vector<1x128xf32>
    %cst_13 = arith.constant 0.000000e+00 : f32
    %19 = vector.broadcast %cst_13 : f32 to vector<1x128xf32>
    %20 = arith.maximumf %18, %19 : vector<1x128xf32>
    %cst_14 = arith.constant 9.99999974E-6 : f32
    %21 = vector.broadcast %cst_14 : f32 to vector<1x128xf32>
    %22 = arith.addf %20, %21 : vector<1x128xf32>
    %23 = math.rsqrt %22 : vector<1x128xf32>
    %24 = arith.mulf %0, %23 : vector<1x128xf32>
    %25 = arith.mulf %11, %24 : vector<1x128xf32>
    %26 = arith.subf %1, %25 : vector<1x128xf32>
    %27 = vector.broadcast %24 : vector<1x128xf32> to vector<8x128xf32>
    %28 = arith.mulf %7, %27 : vector<8x128xf32>
    %29 = vector.broadcast %26 : vector<1x128xf32> to vector<8x128xf32>
    %30 = arith.addf %28, %29 : vector<8x128xf32>
    %cst_15 = arith.constant 0.000000e+00 : f32
    %31 = vector.broadcast %cst_15 : f32 to vector<8x128xf32>
    %32 = arith.maximumf %30, %31 : vector<8x128xf32>
    %33 = arith.truncf %32 : vector<8x128xf32> to vector<8x128xbf16>
    %c0_16 = arith.constant 0 : index
    %c0_17 = arith.constant 0 : index
    %34 = vector.load %arg2[%c0_16, %c0_17] : memref<128x128xbf16, #tpu.memory_space<vmem>>, vector<128x128xbf16>
    %cst_18 = arith.constant dense<0.000000e+00> : vector<8x128xf32>
    %35 = tpu.matmul %33, %34, %cst_18 {dimension_numbers = #tpu.dot_dimension_numbers<[1], [0], [0], [1], [0, 0, 1, 1], [], []>} : vector<8x128xbf16>, vector<128x128xbf16>, vector<8x128xf32> -> vector<8x128xf32>
    %cst_19 = arith.constant dense<0.000000e+00> : vector<128xf32>
    %36 = vector.multi_reduction <add>, %35, %cst_19 [0] : vector<8x128xf32> to vector<128xf32>
    %37 = vector.shape_cast %36 : vector<128xf32> to vector<1x128xf32>
    %cst_20 = arith.constant 1.250000e-01 : f32
    %38 = vector.broadcast %cst_20 : f32 to vector<1x128xf32>
    %39 = arith.mulf %37, %38 : vector<1x128xf32>
    %40 = arith.mulf %35, %35 : vector<8x128xf32>
    %cst_21 = arith.constant dense<0.000000e+00> : vector<128xf32>
    %41 = vector.multi_reduction <add>, %40, %cst_21 [0] : vector<8x128xf32> to vector<128xf32>
    %42 = vector.shape_cast %41 : vector<128xf32> to vector<1x128xf32>
    %cst_22 = arith.constant 1.250000e-01 : f32
    %43 = vector.broadcast %cst_22 : f32 to vector<1x128xf32>
    %44 = arith.mulf %42, %43 : vector<1x128xf32>
    %45 = arith.mulf %39, %39 : vector<1x128xf32>
    %46 = arith.subf %44, %45 : vector<1x128xf32>
    %cst_23 = arith.constant 0.000000e+00 : f32
    %47 = vector.broadcast %cst_23 : f32 to vector<1x128xf32>
    %48 = arith.maximumf %46, %47 : vector<1x128xf32>
    %cst_24 = arith.constant 9.99999974E-6 : f32
    %49 = vector.broadcast %cst_24 : f32 to vector<1x128xf32>
    %50 = arith.addf %48, %49 : vector<1x128xf32>
    %51 = math.rsqrt %50 : vector<1x128xf32>
    %52 = arith.mulf %2, %51 : vector<1x128xf32>
    %53 = arith.mulf %39, %52 : vector<1x128xf32>
    %54 = arith.subf %3, %53 : vector<1x128xf32>
    %55 = vector.broadcast %52 : vector<1x128xf32> to vector<8x128xf32>
    %56 = arith.mulf %35, %55 : vector<8x128xf32>
    %57 = vector.broadcast %54 : vector<1x128xf32> to vector<8x128xf32>
    %58 = arith.addf %56, %57 : vector<8x128xf32>
    %cst_25 = arith.constant 0.000000e+00 : f32
    %59 = vector.broadcast %cst_25 : f32 to vector<8x128xf32>
    %60 = arith.maximumf %58, %59 : vector<8x128xf32>
    %61 = arith.truncf %60 : vector<8x128xf32> to vector<8x128xbf16>
    %c0_26 = arith.constant 0 : index
    %c0_27 = arith.constant 0 : index
    %62 = vector.load %arg3[%c0_26, %c0_27] : memref<128x128xbf16, #tpu.memory_space<vmem>>, vector<128x128xbf16>
    %cst_28 = arith.constant dense<0.000000e+00> : vector<8x128xf32>
    %63 = tpu.matmul %61, %62, %cst_28 {dimension_numbers = #tpu.dot_dimension_numbers<[1], [0], [0], [1], [0, 0, 1, 1], [], []>} : vector<8x128xbf16>, vector<128x128xbf16>, vector<8x128xf32> -> vector<8x128xf32>
    %64 = vector.broadcast %4 : vector<1x128xf32> to vector<8x128xf32>
    %65 = arith.addf %63, %64 : vector<8x128xf32>
    %c0_29 = arith.constant 0 : index
    %c0_30 = arith.constant 0 : index
    %66 = vector.load %arg5[%c0_29, %c0_30] : memref<8x128xf32, #tpu.memory_space<vmem>>, vector<8x128xf32>
    tpu.vector_store %arg5[%c0_29, %c0_30], %65 {strides = array<i32>} : memref<8x128xf32, #tpu.memory_space<vmem>>, vector<8x128xf32>,
    return
  }
}

</mosaic_0001>

<bundles_post_ra>
// kernel: tpu_custom_call.1
= control target key start
LH: loop header
LB: loop body
LE: loop exit
PB: predicated region body
PF: predicated region fallthrough
CT: control target
= control target key end

     0   :  { %10 = vsyncpa [#allocation3], 0  ;;  %s877_s0 = inlined_call_operand.hbm [shape: bf16[8,128], index: 0, kind: input, shape index: {}]   ;;  %s878_s1 = inlined_call_operand.hbm [shape: bf16[128,128], index: 1, kind: input, shape index: {}]   ;;  %s879_s2 = inlined_call_operand.hbm [shape: bf16[128,128], index: 2, kind: input, shape index: {}]   ;;  %s880_s3 = inlined_call_operand.hbm [shape: bf16[128,128], index: 3, kind: input, shape index: {}]   ;;  %s881_s4 = inlined_call_operand.hbm [shape: f32[8,128], index: 4, kind: input, shape index: {}]   ;;  %s882_s5 = inlined_call_operand.hbm [shape: f32[8,128], index: 5, kind: output, shape index: {}]  }
   0x1   :  { %11 = vsyncpa [#allocation6], 0 }
   0x2   :  { %12 = vsyncpa [#allocation9], 0 }
   0x3   :  { %13 = vsyncpa [#allocation4], 0  ;;  %s774_s18 = smov [#allocation5]  }
   0x4   :  { %s29_s19 = sshll.u32 %s774_s18, 4  ;;  %s30_s19 = int_to_ptr.vmem [resolvable:$true] %s29_s19 }
   0x5   :  { %s654_s20 = scalar_lea.vmem %s30_s19, 1024  ;;  %p659_p1 = scmp.lt.s32.totalorder %s30_s19, %s30_s19 }
   0x6   :  { %p655_p0 = scmp.ne.s32.totalorder %s30_s19, %s654_s20  ;;  %p660_p2 = scmp.lt.s32.totalorder %s654_s20, %s654_s20 }
   0x8   :  { %p661_p3 = por %p660_p2, %p659_p1 }
   0xa   :  { %p662_p4 = pnand %p661_p3, %p655_p0 }
   0xc   :  { %665 = shalt.err (!%p662_p4)
}
   0xd   :  { %s775_s21 = smov 64   ;;  %s776_s22 = smov 4  }
   0xe   :  { %35 = dma.hbm_to_vmem [thread:$0]  %s878_s1, 1024, %s30_s19, [#allocation6], %s775_s21, %s775_s21, %s776_s22  }
   0xf   :  { %s777_s25 = smov [#allocation8]   ;;  %s778_s27 = smov [#allocation2]  }
  0x10   :  { %s53_s26 = sshll.u32 %s777_s25, 4  ;;  %s20_s28 = sshll.u32 %s778_s27, 4  ;;  %s54_s26 = int_to_ptr.vmem [resolvable:$true] %s53_s26  ;;  %s21_s28 = int_to_ptr.vmem [resolvable:$true] %s20_s28 }
  0x11   :  { %s674_s29 = scalar_lea.vmem %s54_s26, 1024  ;;  %p679_p6 = scmp.lt.s32.totalorder %s54_s26, %s54_s26 }
  0x12   :  { %p675_p5 = scmp.ne.s32.totalorder %s54_s26, %s674_s29  ;;  %p680_p7 = scmp.lt.s32.totalorder %s674_s29, %s674_s29 }
  0x14   :  { %p681_p8 = por %p680_p7, %p679_p6 }
  0x16   :  { %p682_p9 = pnand %p681_p8, %p675_p5 }
  0x18   :  { %685 = shalt.err (!%p682_p9)
}
  0x19   :  { %59 = dma.hbm_to_vmem [thread:$0]  %s880_s3, 1024, %s54_s26, [#allocation9], %s775_s21, %s775_s21, %s776_s22  }
  0x1a   :  { %s694_s1 = scalar_lea.vmem %s21_s28, 64  ;;  %p699_p11 = scmp.lt.s32.totalorder %s21_s28, %s21_s28 }
  0x1b   :  { %p695_p10 = scmp.ne.s32.totalorder %s21_s28, %s694_s1  ;;  %p700_p12 = scmp.lt.s32.totalorder %s694_s1, %s694_s1 }
  0x1d   :  { %p701_p13 = por %p700_p12, %p699_p11 }
  0x1f   :  { %p702_p0 = pnand %p701_p13, %p695_p10 }
  0x21   :  { %705 = shalt.err (!%p702_p0)
}
  0x22   :  { %23 = dma.hbm_to_vmem [thread:$0]  %s877_s0, 64, %s21_s28, [#allocation3]  }
  0x23   :  { %s779_s9 = smov [#allocation7]   ;;  %s780_s11 = smov [#allocation10]  }
  0x24   :  { %s41_s10 = sshll.u32 %s779_s9, 4  ;;  %s66_s12 = sshll.u32 %s780_s11, 4  ;;  %s42_s10 = int_to_ptr.vmem [resolvable:$true] %s41_s10  ;;  %s67_s12 = int_to_ptr.vmem [resolvable:$true] %s66_s12 }
  0x25   :  { %s714_s13 = scalar_lea.vmem %s42_s10, 1024  ;;  %p719_p2 = scmp.lt.s32.totalorder %s42_s10, %s42_s10 }
  0x26   :  { %p715_p1 = scmp.ne.s32.totalorder %s42_s10, %s714_s13  ;;  %p720_p3 = scmp.lt.s32.totalorder %s714_s13, %s714_s13 }
  0x28   :  { %p721_p4 = por %p720_p3, %p719_p2 }
  0x2a   :  { %p722_p5 = pnand %p721_p4, %p715_p1 }
  0x2c   :  { %725 = shalt.err (!%p722_p5)
}
  0x2d   :  { %47 = dma.hbm_to_vmem [thread:$0]  %s879_s2, 1024, %s42_s10, [#allocation6], %s775_s21, %s775_s21, %s776_s22  }
  0x2e   :  { %s734_s0 = scalar_lea.vmem %s67_s12, 128  ;;  %p739_p7 = scmp.lt.s32.totalorder %s67_s12, %s67_s12 }
  0x2f   :  { %p735_p6 = scmp.ne.s32.totalorder %s67_s12, %s734_s0  ;;  %p740_p8 = scmp.lt.s32.totalorder %s734_s0, %s734_s0 }
  0x31   :  { %p741_p9 = por %p740_p8, %p739_p7 }
  0x33   :  { %p742_p10 = pnand %p741_p9, %p735_p6 }
  0x35   :  { %745 = shalt.err (!%p742_p10)
}
  0x36   :  { %69 = dma.hbm_to_vmem [thread:$0]  %s881_s4, 128, %s67_s12, [#allocation9]  }
  0x37   :  { %766 = dma.done.wait [#allocation3], 64  }
  0x38   :  { %767 = vsyncadd [#allocation3], 4294967232 }
  0x39   :  { %768 = dma.done.wait [#allocation6], 2048  }
  0x3a   :  { %769 = vsyncadd [#allocation6], 4294965248 }
  0x3b   :  { %770 = dma.done.wait [#allocation9], 1152  }
  0x3c   :  { %771 = vsyncadd [#allocation9], 4294966144  ;;  %v781_v0 = vmov 0.0   ;;  %vm782_vm0 = vmmov 0   ;;  %v618_v1 = vld [vmem:[#allocation5 + $0x38] sm:$0xff]   ;;  %v619_v2 = vld [vmem:[#allocation5 + $0x30] sm:$0xff]   ;;  %v219_v41 = vlaneseq }
  0x3d   :  { %548 = vmatprep.subr.bf16.mxu0 %v781_v0  ;;  %564 = vmatprep.mubr.msk.bf16.mxu0 %vm782_vm0, %v781_v0  ;;  %v620_v3 = vld [vmem:[#allocation5 + $0x28] sm:$0xff]   ;;  %v621_v4 = vld [vmem:[#allocation5 + $0x20] sm:$0xff]   ;;  %v622_v5 = vld [vmem:[#allocation5 + $0x18] sm:$0xff]   ;;  %s783_s2 = smov [#allocation11]  }
  0x3e   :  { %568 = vmatprep.subr.bf16.mxu1 %v781_v0  ;;  %584 = vmatprep.mubr.msk.bf16.mxu1 %vm782_vm0, %v781_v0  ;;  %v623_v6 = vld [vmem:[#allocation5 + $0x10] sm:$0xff]   ;;  %v624_v7 = vld [vmem:[#allocation5 + $0x8] sm:$0xff]   ;;  %v625_v8 = vld [vmem:[#allocation5] sm:$0xff]   ;;  %v220_v42 = vshrl.u32 %v219_v41, 7  ;;  %s485_s4 = sshll.u32 %s783_s2, 4  ;;  %s486_s4 = int_to_ptr.vmem [resolvable:$true] %s485_s4 }
  0x3f   :  { %549 = vmatpush3.bf16.msra.mxu0 %v618_v1  ;;  %v91_v9 = vld [vmem:[#allocation2] sm:$0xf]  ;;  %v627_v11 = vld [vmem:[#allocation7 + $0x30] sm:$0xff]   ;;  %v628_v12 = vld [vmem:[#allocation7 + $0x28] sm:$0xff]   ;;  %s746_s17 = scalar_lea.vmem %s486_s4, 128  ;;  %p751_p12 = scmp.lt.s32.totalorder %s486_s4, %s486_s4 }
  0x40   :  { %550 = vmatprep.subr.bf16.mxu0 %v781_v0  ;;  %v626_v10 = vld [vmem:[#allocation7 + $0x38] sm:$0xff]   ;;  %v629_v13 = vld [vmem:[#allocation7 + $0x20] sm:$0xff]   ;;  %v631_v15 = vld [vmem:[#allocation7 + $0x10] sm:$0xff]   ;;  %v861_v44 = vsub.s32 0, %v220_v42  ;;  %p747_p11 = scmp.ne.s32.totalorder %s486_s4, %s746_s17  ;;  %p752_p13 = scmp.lt.s32.totalorder %s746_s17, %s746_s17 }
  0x41   :  { %569 = vmatpush3.bf16.msra.mxu1 %v626_v10  ;;  %v630_v14 = vld [vmem:[#allocation7 + $0x18] sm:$0xff]   ;;  %v632_v16 = vld [vmem:[#allocation7 + $0x8] sm:$0xff]   ;;  %v633_v17 = vld [vmem:[#allocation7] sm:$0xff]  }
  0x42   :  { %570 = vmatprep.subr.bf16.mxu1 %v781_v0  ;;  %v86_v43 = vld [vmem:[#allocation10] sm:$0x1]  ;;  %v87_v47 = vld [vmem:[#allocation10 + $0x1] sm:$0x1]  ;;  %v634_v56 = vld [vmem:[#allocation8 + $0x38] sm:$0xff]   ;;  %p753_p0 = por %p752_p13, %p751_p12 }
  0x43   :  { %551 = vmatpush3.bf16.msra.mxu0 %v619_v2  ;;  %v635_v57 = vld [vmem:[#allocation8 + $0x30] sm:$0xff]   ;;  %v636_v58 = vld [vmem:[#allocation8 + $0x28] sm:$0xff]   ;;  %v637_v59 = vld [vmem:[#allocation8 + $0x20] sm:$0xff]  }
  0x44   :  { %552 = vmatprep.subr.bf16.mxu0 %v781_v0  ;;  %v638_v60 = vld [vmem:[#allocation8 + $0x18] sm:$0xff]   ;;  %v639_v61 = vld [vmem:[#allocation8 + $0x10] sm:$0xff]   ;;  %v640_v62 = vld [vmem:[#allocation8 + $0x8] sm:$0xff]   ;;  %p754_p1 = pnand %p753_p0, %p747_p11 }
  0x45   :  { %571 = vmatpush3.bf16.msra.mxu1 %v627_v11  ;;  %v641_v63 = vld [vmem:[#allocation8] sm:$0xff]  }
  0x46   :  { %572 = vmatprep.subr.bf16.mxu1 %v781_v0 }
  0x47   :  { %553 = vmatpush3.bf16.msra.mxu0 %v620_v3 }
  0x48   :  { %554 = vmatprep.subr.bf16.mxu0 %v781_v0 }
  0x49   :  { %573 = vmatpush3.bf16.msra.mxu1 %v628_v12 }
  0x4a   :  { %574 = vmatprep.subr.bf16.mxu1 %v781_v0 }
  0x4b   :  { %555 = vmatpush3.bf16.msra.mxu0 %v621_v4 }
  0x4c   :  { %556 = vmatprep.subr.bf16.mxu0 %v781_v0 }
  0x4d   :  { %575 = vmatpush3.bf16.msra.mxu1 %v629_v13 }
  0x4e   :  { %576 = vmatprep.subr.bf16.mxu1 %v781_v0 }
  0x4f   :  { %557 = vmatpush3.bf16.msra.mxu0 %v622_v5 }
  0x50   :  { %558 = vmatprep.subr.bf16.mxu0 %v781_v0 }
  0x51   :  { %577 = vmatpush3.bf16.msra.mxu1 %v630_v14 }
  0x52   :  { %578 = vmatprep.subr.bf16.mxu1 %v781_v0 }
  0x53   :  { %559 = vmatpush3.bf16.msra.mxu0 %v623_v6 }
  0x54   :  { %560 = vmatprep.subr.bf16.mxu0 %v781_v0 }
  0x55   :  { %579 = vmatpush3.bf16.msra.mxu1 %v631_v15 }
  0x56   :  { %580 = vmatprep.subr.bf16.mxu1 %v781_v0 }
  0x57   :  { %561 = vmatpush3.bf16.msra.mxu0 %v624_v7 }
  0x58   :  { %562 = vmatprep.subr.bf16.mxu0 %v781_v0 }
  0x59   :  { %581 = vmatpush3.bf16.msra.mxu1 %v632_v16 }
  0x5a   :  { %582 = vmatprep.subr.bf16.mxu1 %v781_v0 }
  0x5b   :  { %563 = vmatpush3.bf16.msra.mxu0 %v625_v8 }
  0x5c   :  { %588 = vmatprep.subr.bf16.mxu0 %v781_v0 }
  0x5d   :  { %583 = vmatpush3.bf16.msra.mxu1 %v633_v17 }
  0x5e   :  { %565 = vmatmul.mubr.bf16.vlgmr.msra.gmra.mxu0 %v91_v9 }
  0x5f   :  { %604 = vmatprep.mubr.msk.bf16.mxu0 %vm782_vm0, %v781_v0  ;;  %589 = vmatpush3.bf16.msra.mxu0 %v634_v56 }
  0x60   :  { %590 = vmatprep.subr.bf16.mxu0 %v781_v0 }
  0x63   :  { %591 = vmatpush3.bf16.msra.mxu0 %v635_v57 }
  0x64   :  { %592 = vmatprep.subr.bf16.mxu0 %v781_v0 }
  0x67   :  { %593 = vmatpush3.bf16.msra.mxu0 %v636_v58 }
  0x68   :  { %594 = vmatprep.subr.bf16.mxu0 %v781_v0 }
  0x6b   :  { %595 = vmatpush3.bf16.msra.mxu0 %v637_v59 }
  0x6c   :  { %596 = vmatprep.subr.bf16.mxu0 %v781_v0 }
  0x6f   :  { %597 = vmatpush3.bf16.msra.mxu0 %v638_v60 }
  0x70   :  { %598 = vmatprep.subr.bf16.mxu0 %v781_v0 }
  0x73   :  { %599 = vmatpush3.bf16.msra.mxu0 %v639_v61 }
  0x74   :  { %600 = vmatprep.subr.bf16.mxu0 %v781_v0 }
  0x77   :  { %601 = vmatpush3.bf16.msra.mxu0 %v640_v62 }
  0x78   :  { %602 = vmatprep.subr.bf16.mxu0 %v781_v0 }
  0x7b   :  { %603 = vmatpush3.bf16.msra.mxu0 %v641_v63 }
 0x11e   :  { %v190_v18 = vpop.f32.mrf.mxu0 }
 0x11f   :  { %v196_v19 = vrot.slane %v190_v18, 4  ;;  %v203_v20 = vmul.f32 %v190_v18, %v190_v18 }
 0x120   :  { %v566_v21 = vpop.f32.mrf.mxu0 }
 0x121   :  { %v197_v22 = vadd.f32 %v196_v19, %v190_v18  ;;  %v204_v23 = vrot.slane %v203_v20, 4 }
 0x122   :  { %v193_v24 = vpop.f32.mrf.mxu0 }
 0x123   :  { %v198_v25 = vrot.slane %v197_v22, 2  ;;  %v205_v26 = vadd.f32 %v204_v23, %v203_v20  ;;  %v88_v23 = vld [vmem:[#allocation10 + $0x2] sm:$0x1] }
 0x124   :  { %v567_v27 = vpop.f32.mrf.mxu0 }
 0x125   :  { %v199_v28 = vadd.f32 %v198_v25, %v197_v22  ;;  %v206_v29 = vrot.slane %v205_v26, 2 }
 0x127   :  { %v200_v30 = vrot.slane %v199_v28, 1  ;;  %v207_v31 = vadd.f32 %v206_v29, %v205_v26  ;;  %v89_v26 = vld [vmem:[#allocation10 + $0x3] sm:$0x1] }
 0x129   :  { %v201_v32 = vadd.f32 %v200_v30, %v199_v28  ;;  %v208_v33 = vrot.slane %v207_v31, 1 }
 0x12b   :  { %v202_v34 = vmul.f32 0.125, %v201_v32  ;;  %v209_v35 = vadd.f32 %v208_v33, %v207_v31 }
 0x12d   :  { %v210_v36 = vmul.f32 0.125, %v209_v35  ;;  %v211_v37 = vmul.f32 %v202_v34, %v202_v34  ;;  %v512_v35 = vld [vmem:[#allocation10 + $0x4] ss:$0 sm:$0xff] }
 0x12f   :  { %v212_v38 = vsub.f32 %v210_v36, %v211_v37 }
 0x131   :  { %v213_v39 = vmax.f32 %v212_v38, 0.0 }
 0x133   :  { %v214_v40 = vadd.f32 1e-05, %v213_v39 }
 0x135   :  { %642 = vrsqrt.f32 %v214_v40 }
 0x142   :  { %v643_v45 = vpop.eup %642 }
 0x143   :  { %v216_v46 = vmul.f32 %v643_v45, %v86_v43 }
 0x145   :  { %v222_v48 = vrot.slane %v216_v46, %v861_v44  ;;  %v217_v49 = vmul.f32 %v216_v46, %v202_v34 }
 0x147   :  { %v218_v50 = vsub.f32 %v87_v47, %v217_v49  ;;  %v223_v51 = vmul.f32 %v222_v48, %v190_v18 }
 0x149   :  { %v227_v52 = vrot.slane %v218_v50, %v861_v44 }
 0x14b   :  { %v228_v53 = vadd.f32 %v227_v52, %v223_v51 }
 0x14d   :  { %v229_v54 = vmax.f32 %v228_v53, 0.0 }
 0x14f   :  { %v230_v55 = vpack.c.bf16 %v229_v54, %v229_v54 }
 0x151   :  { %585 = vmatmul.mubr.bf16.vlgmr.msra.gmra.mxu1 %v230_v55 }
 0x211   :  { %v329_v1 = vpop.f32.mrf.mxu1 }
 0x212   :  { %v335_v2 = vrot.slane %v329_v1, 4  ;;  %v342_v3 = vmul.f32 %v329_v1, %v329_v1 }
 0x213   :  { %v586_v4 = vpop.f32.mrf.mxu1 }
 0x214   :  { %v336_v5 = vadd.f32 %v335_v2, %v329_v1  ;;  %v343_v6 = vrot.slane %v342_v3, 4 }
 0x215   :  { %v332_v7 = vpop.f32.mrf.mxu1 }
 0x216   :  { %v337_v8 = vrot.slane %v336_v5, 2  ;;  %v344_v9 = vadd.f32 %v343_v6, %v342_v3 }
 0x217   :  { %v587_v10 = vpop.f32.mrf.mxu1 }
 0x218   :  { %v338_v11 = vadd.f32 %v337_v8, %v336_v5  ;;  %v345_v12 = vrot.slane %v344_v9, 2 }
 0x21a   :  { %v339_v13 = vrot.slane %v338_v11, 1  ;;  %v346_v14 = vadd.f32 %v345_v12, %v344_v9 }
 0x21c   :  { %v340_v15 = vadd.f32 %v339_v13, %v338_v11  ;;  %v347_v16 = vrot.slane %v346_v14, 1 }
 0x21e   :  { %v341_v17 = vmul.f32 0.125, %v340_v15  ;;  %v348_v0 = vadd.f32 %v347_v16, %v346_v14 }
 0x220   :  { %v349_v18 = vmul.f32 0.125, %v348_v0  ;;  %v350_v19 = vmul.f32 %v341_v17, %v341_v17 }
 0x222   :  { %v351_v20 = vsub.f32 %v349_v18, %v350_v19 }
 0x224   :  { %v352_v21 = vmax.f32 %v351_v20, 0.0 }
 0x226   :  { %v353_v22 = vadd.f32 1e-05, %v352_v21 }
 0x228   :  { %644 = vrsqrt.f32 %v353_v22 }
 0x235   :  { %v645_v24 = vpop.eup %644 }
 0x236   :  { %v355_v25 = vmul.f32 %v645_v24, %v88_v23 }
 0x238   :  { %v356_v27 = vmul.f32 %v355_v25, %v341_v17  ;;  %v361_v28 = vrot.slane %v355_v25, %v861_v44 }
 0x23a   :  { %v357_v29 = vsub.f32 %v89_v26, %v356_v27  ;;  %v362_v30 = vmul.f32 %v361_v28, %v329_v1 }
 0x23c   :  { %v366_v31 = vrot.slane %v357_v29, %v861_v44 }
 0x23e   :  { %v367_v32 = vadd.f32 %v366_v31, %v362_v30 }
 0x240   :  { %v368_v33 = vmax.f32 %v367_v32, 0.0 }
 0x242   :  { %v369_v34 = vpack.c.bf16 %v368_v33, %v368_v33 }
 0x244   :  { %605 = vmatmul.mubr.bf16.vlgmr.msra.gmra.mxu0 %v369_v34 }
 0x304   :  { %v472_v36 = vpop.f32.mrf.mxu0 }
 0x305   :  { %v473_v37 = vadd.f32 %v512_v35, %v472_v36 }
 0x306   :  { %v606_v38 = vpop.f32.mrf.mxu0 }
 0x307   :  { %478 = vst [vmem:[#allocation11] sm:$0xff] %v473_v37 }
 0x308   :  { %v475_v39 = vpop.f32.mrf.mxu0 }
 0x309   :  { %757 = shalt.err (!%p754_p1)
}
 0x30a   :  { %488 = dma.vmem_to_hbm [thread:$0]  %s486_s4, 128, %s882_s5, [#allocation4]   ;;  %v607_v40 = vpop.f32.mrf.mxu0 }
 0x30b   :  { %772 = dma.done.wait [#allocation4], 128  }
 0x30c   :  { %773 = vsyncadd [#allocation4], 4294967168 }
 0x30d   :  { %492 = vsyncpa [#allocation3], 1 }
 0x30e   :  { %493 = vsyncpa [#allocation6], 1 }
 0x30f   :  { %494 = vsyncpa [#allocation9], 1 }
 0x310   :  { %495 = vsyncpa [#allocation4], 1 }

</bundles_post_ra>
